<compile_context>
chip_gen: v6e
topology: v6e:2x2x1
jax: 0.10.0
libtpu: 0.0.40
codegen_flags: <defaults>
</compile_context>

<pallas_src>
import jax
import jax.numpy as jnp
from jax.experimental import pallas as pl
from jax.experimental.pallas import tpu as pltpu


def critic_kernel(x_ref, w1_ref, b1_ref, w2_ref, b2_ref, w3_ref, out_ref):
    # Linear 1 (+ ReLU): bf16 operands, f32 accumulate; bias/ReLU in f32.
    x = x_ref[...].astype(jnp.bfloat16)
    h1 = jnp.dot(x, w1_ref[...], preferred_element_type=jnp.float32)
    h1 = jnp.maximum(h1 + b1_ref[...], 0.0)

    # Linear 2 (+ ReLU)
    h2 = jnp.dot(h1.astype(jnp.bfloat16), w2_ref[...],
                 preferred_element_type=jnp.float32)
    h2 = jnp.maximum(h2 + b2_ref[...], 0.0)

    # Linear 3: (Hp -> 128) MXU pass, real output lives in lane 0; keeping the
    # full 128-lane block makes the output store lane-dense (no vst.msk).
    v = jnp.dot(h2.astype(jnp.bfloat16), w3_ref[...],
                preferred_element_type=jnp.float32)
    out_ref[...] = v.astype(out_ref.dtype)


def _pick_tile_b(B):
    """Multiple of 8, large (amortize ~0.35us/step), but keep grid >= 2 steps
    when the batch allows it so v7x's two TensorCores both get work."""
    Bp8 = pl.cdiv(B, 8) * 8
    cap = 2048
    tile_b = min(cap, Bp8)
    if Bp8 >= 16:
        half = max(8, (Bp8 // 2) // 8 * 8)
        tile_b = min(tile_b, half)
    return tile_b


def critic_forward(obs, actions, kernel_params, *, tile_b=None):
    """obs: (B, state_dim), actions: (B, action_dim) -> (B, 1) value."""
    w1p, b1p, w2p, b2p, w3p, b3 = kernel_params

    # One concat in the wrapper (single XLA op, done once) -> one input DMA.
    x = jnp.concatenate([obs, actions], axis=-1)
    B, F = x.shape

    if tile_b is None:
        tile_b = _pick_tile_b(B)
    Bp = pl.cdiv(B, tile_b) * tile_b
    if Bp != B:
        x = jnp.pad(x, ((0, Bp - B), (0, 0)))

    grid = (Bp // tile_b,)

    # Weights/biases: same block every grid step -> DMA'd once, stay resident.
    def resident(a):
        return pl.BlockSpec(a.shape, lambda i: tuple(0 for _ in a.shape))

    out = pl.pallas_call(
        critic_kernel,
        out_shape=jax.ShapeDtypeStruct((Bp, 128), jnp.float32),
        grid_spec=pltpu.PrefetchScalarGridSpec(
            num_scalar_prefetch=0,
            grid=grid,
            in_specs=[pl.BlockSpec((tile_b, F), lambda i: (i, 0)),
                      resident(w1p), resident(b1p),
                      resident(w2p), resident(b2p),
                      resident(w3p)],
            out_specs=pl.BlockSpec((tile_b, 128), lambda i: (i, 0)),
        ),
        compiler_params=pltpu.CompilerParams(
            dimension_semantics=("parallel",)),
    )(x, w1p, b1p, w2p, b2p, w3p)

    # Lane 0 holds the real value; add the scalar output bias here.
    return out[:B, :1] + b3


def init_critic_params(key, state_dim, action_dim, hidden_dim):
    """nn.Linear-style init (uniform +-1/sqrt(fan_in)); weights stored (in, out)."""
    def linear(key, fan_in, fan_out):
        kw, kb = jax.random.split(key)
        bound = float(fan_in) ** -0.5
        w = jax.random.uniform(kw, (fan_in, fan_out), jnp.float32, -bound, bound)
        b = jax.random.uniform(kb, (fan_out,), jnp.float32, -bound, bound)
        return w, b

    k1, k2, k3 = jax.random.split(key, 3)
    in_dim = state_dim + action_dim
    w1, b1 = linear(k1, in_dim, hidden_dim)
    w2, b2 = linear(k2, hidden_dim, hidden_dim)
    w3, b3 = linear(k3, hidden_dim, 1)
    return (w1, b1, w2, b2, w3, b3)


def pack_params_for_kernel(params, state_dim, action_dim, hidden_dim):
    """Zero-pad hidden dim to a lane-dense multiple of 128, cast matmul
    operands to bf16 (f32 accumulation in-kernel), pad W3 to a (Hp,128)
    block with the real column in lane 0. Math unchanged (ReLU(0)=0)."""
    w1, b1, w2, b2, w3, b3 = params
    Hp = max(128, pl.cdiv(hidden_dim, 128) * 128)
    pad_h = Hp - hidden_dim

    w1p = jnp.pad(w1, ((0, 0), (0, pad_h))).astype(jnp.bfloat16)        # (S+A, Hp)
    b1p = jnp.pad(b1.reshape(1, -1), ((0, 0), (0, pad_h)))              # (1, Hp) f32
    w2p = jnp.pad(w2, ((0, pad_h), (0, pad_h))).astype(jnp.bfloat16)    # (Hp, Hp)
    b2p = jnp.pad(b2.reshape(1, -1), ((0, 0), (0, pad_h)))              # (1, Hp) f32
    w3p = jnp.pad(w3, ((0, pad_h), (0, 127))).astype(jnp.bfloat16)      # (Hp, 128)
    b3s = b3.reshape(1, 1)                                              # added in wrapper
    return (w1p, b1p, w2p, b2p, w3p, b3s)


# TODO(synk): for DDPG/TD3 training, twin/target critic heads could be stacked
# along a leading weight axis and evaluated in one pallas_call to amortize the
# fixed per-call dispatch + weight-DMA cost.

if __name__ == "__main__":
    # Pendulum-v1: state_dim = 3, action_dim = 1
    state_dim, action_dim, hidden_dim = 3, 1, 32
    batch = 8

    key = jax.random.PRNGKey(0)
    k_obs, k_act, k_par = jax.random.split(key, 3)

    obs = jax.random.normal(k_obs, (batch, state_dim), jnp.float32)
    actions = jax.random.normal(k_act, (batch, action_dim), jnp.float32)

    params = init_critic_params(k_par, state_dim, action_dim, hidden_dim)
    kernel_params = pack_params_for_kernel(params, state_dim, action_dim, hidden_dim)

    value = critic_forward(obs, actions, kernel_params)
    value = jax.block_until_ready(value)

    # reference check in plain JAX (same math as the PyTorch module, f32)
    w1, b1, w2, b2, w3, b3 = params
    x = jnp.concatenate([obs, actions], axis=-1)
    ref = jnp.maximum(x @ w1 + b1, 0.0)
    ref = jnp.maximum(ref @ w2 + b2, 0.0)
    ref = ref @ w3 + b3

    assert value.shape == (batch, 1)
    # bf16 matmul operands (f32 accumulation) -> loosened tolerance vs f32 ref.
    assert jnp.allclose(value, ref, atol=5e-2, rtol=5e-2)

    print("KERNEL_OK")
</pallas_src>

<mosaic_0001>
module attributes {stable_mosaic.version = 11 : i64} {
  func.func @critic_kernel(%arg0: i32, %arg1: memref<8x4xf32, #tpu.memory_space<vmem>>, %arg2: memref<4x128xbf16, #tpu.memory_space<vmem>>, %arg3: memref<1x128xf32, #tpu.memory_space<vmem>>, %arg4: memref<128x128xbf16, #tpu.memory_space<vmem>>, %arg5: memref<1x128xf32, #tpu.memory_space<vmem>>, %arg6: memref<128x128xbf16, #tpu.memory_space<vmem>>, %arg7: memref<8x128xf32, #tpu.memory_space<vmem>>) attributes {dimension_semantics = [#tpu.dimension_semantics<parallel>], iteration_bounds = array<i64: 1>, scalar_prefetch = 0 : i64, scratch_operands = 0 : i64, tpu.core_type = #tpu.core_type<tc>, window_params = [{transform_indices = @transform_0, window_bounds = array<i64: 8, 4>}, {pipeline_mode = #tpu.pipeline_mode<synchronous>, transform_indices = @transform_1, window_bounds = array<i64: 4, 128>}, {pipeline_mode = #tpu.pipeline_mode<synchronous>, transform_indices = @transform_2, window_bounds = array<i64: 1, 128>}, {pipeline_mode = #tpu.pipeline_mode<synchronous>, transform_indices = @transform_3, window_bounds = array<i64: 128, 128>}, {pipeline_mode = #tpu.pipeline_mode<synchronous>, transform_indices = @transform_4, window_bounds = array<i64: 1, 128>}, {pipeline_mode = #tpu.pipeline_mode<synchronous>, transform_indices = @transform_5, window_bounds = array<i64: 128, 128>}, {transform_indices = @transform_6, window_bounds = array<i64: 8, 128>}]} {
    %c0 = arith.constant 0 : index
    %c0_0 = arith.constant 0 : index
    %0 = vector.load %arg1[%c0, %c0_0] : memref<8x4xf32, #tpu.memory_space<vmem>>, vector<8x4xf32>
    %1 = arith.truncf %0 : vector<8x4xf32> to vector<8x4xbf16>
    %c0_1 = arith.constant 0 : index
    %c0_2 = arith.constant 0 : index
    %2 = vector.load %arg2[%c0_1, %c0_2] : memref<4x128xbf16, #tpu.memory_space<vmem>>, vector<4x128xbf16>
    %cst = arith.constant dense<0.000000e+00> : vector<8x128xf32>
    %3 = tpu.matmul %1, %2, %cst {dimension_numbers = #tpu.dot_dimension_numbers<[1], [0], [0], [1], [0, 0, 1, 1], [], []>} : vector<8x4xbf16>, vector<4x128xbf16>, vector<8x128xf32> -> vector<8x128xf32>
    %c0_3 = arith.constant 0 : index
    %c0_4 = arith.constant 0 : index
    %4 = vector.load %arg3[%c0_3, %c0_4] : memref<1x128xf32, #tpu.memory_space<vmem>>, vector<1x128xf32>
    %5 = vector.broadcast %4 : vector<1x128xf32> to vector<8x128xf32>
    %6 = arith.addf %3, %5 : vector<8x128xf32>
    %cst_5 = arith.constant 0.000000e+00 : f32
    %7 = vector.broadcast %cst_5 : f32 to vector<8x128xf32>
    %8 = arith.maximumf %6, %7 : vector<8x128xf32>
    %9 = arith.truncf %8 : vector<8x128xf32> to vector<8x128xbf16>
    %c0_6 = arith.constant 0 : index
    %c0_7 = arith.constant 0 : index
    %10 = vector.load %arg4[%c0_6, %c0_7] : memref<128x128xbf16, #tpu.memory_space<vmem>>, vector<128x128xbf16>
    %cst_8 = arith.constant dense<0.000000e+00> : vector<8x128xf32>
    %11 = tpu.matmul %9, %10, %cst_8 {dimension_numbers = #tpu.dot_dimension_numbers<[1], [0], [0], [1], [0, 0, 1, 1], [], []>} : vector<8x128xbf16>, vector<128x128xbf16>, vector<8x128xf32> -> vector<8x128xf32>
    %c0_9 = arith.constant 0 : index
    %c0_10 = arith.constant 0 : index
    %12 = vector.load %arg5[%c0_9, %c0_10] : memref<1x128xf32, #tpu.memory_space<vmem>>, vector<1x128xf32>
    %13 = vector.broadcast %12 : vector<1x128xf32> to vector<8x128xf32>
    %14 = arith.addf %11, %13 : vector<8x128xf32>
    %cst_11 = arith.constant 0.000000e+00 : f32
    %15 = vector.broadcast %cst_11 : f32 to vector<8x128xf32>
    %16 = arith.maximumf %14, %15 : vector<8x128xf32>
    %17 = arith.truncf %16 : vector<8x128xf32> to vector<8x128xbf16>
    %c0_12 = arith.constant 0 : index
    %c0_13 = arith.constant 0 : index
    %18 = vector.load %arg6[%c0_12, %c0_13] : memref<128x128xbf16, #tpu.memory_space<vmem>>, vector<128x128xbf16>
    %cst_14 = arith.constant dense<0.000000e+00> : vector<8x128xf32>
    %19 = tpu.matmul %17, %18, %cst_14 {dimension_numbers = #tpu.dot_dimension_numbers<[1], [0], [0], [1], [0, 0, 1, 1], [], []>} : vector<8x128xbf16>, vector<128x128xbf16>, vector<8x128xf32> -> vector<8x128xf32>
    %c0_15 = arith.constant 0 : index
    %c0_16 = arith.constant 0 : index
    %20 = vector.load %arg7[%c0_15, %c0_16] : memref<8x128xf32, #tpu.memory_space<vmem>>, vector<8x128xf32>
    tpu.vector_store %arg7[%c0_15, %c0_16], %19 {strides = array<i32>} : memref<8x128xf32, #tpu.memory_space<vmem>>, vector<8x128xf32>,
    return
  }
  func.func @transform_0(%arg0: i32) -> (i32, i32) {
    %c0_i32 = arith.constant 0 : i32
    %c0_i32_0 = arith.constant 0 : i32
    return %arg0, %c0_i32 : i32, i32
  }
  func.func @transform_1(%arg0: i32) -> (i32, i32) {
    %c0_i32 = arith.constant 0 : i32
    %c0_i32_0 = arith.constant 0 : i32
    %c0_i32_1 = arith.constant 0 : i32
    return %c0_i32, %c0_i32_0 : i32, i32
  }
  func.func @transform_2(%arg0: i32) -> (i32, i32) {
    %c0_i32 = arith.constant 0 : i32
    %c0_i32_0 = arith.constant 0 : i32
    %c0_i32_1 = arith.constant 0 : i32
    return %c0_i32, %c0_i32_0 : i32, i32
  }
  func.func @transform_3(%arg0: i32) -> (i32, i32) {
    %c0_i32 = arith.constant 0 : i32
    %c0_i32_0 = arith.constant 0 : i32
    %c0_i32_1 = arith.constant 0 : i32
    return %c0_i32, %c0_i32_0 : i32, i32
  }
  func.func @transform_4(%arg0: i32) -> (i32, i32) {
    %c0_i32 = arith.constant 0 : i32
    %c0_i32_0 = arith.constant 0 : i32
    %c0_i32_1 = arith.constant 0 : i32
    return %c0_i32, %c0_i32_0 : i32, i32
  }
  func.func @transform_5(%arg0: i32) -> (i32, i32) {
    %c0_i32 = arith.constant 0 : i32
    %c0_i32_0 = arith.constant 0 : i32
    %c0_i32_1 = arith.constant 0 : i32
    return %c0_i32, %c0_i32_0 : i32, i32
  }
  func.func @transform_6(%arg0: i32) -> (i32, i32) {
    %c0_i32 = arith.constant 0 : i32
    %c0_i32_0 = arith.constant 0 : i32
    return %arg0, %c0_i32 : i32, i32
  }
}

</mosaic_0001>

<bundles_post_ra>
// kernel: tpu_custom_call.1
= control target key start
LH: loop header
LB: loop body
LE: loop exit
PB: predicated region body
PF: predicated region fallthrough
CT: control target
= control target key end

     0   :  { %11 = vsyncpa [#allocation3], 0  ;;  %s607_s0 = inlined_call_operand.vmem [shape: f32[8,4], index: 0, kind: input, shape index: {}]   ;;  %s608_s1 = inlined_call_operand.vmem [shape: bf16[4,128], index: 1, kind: input, shape index: {}]   ;;  %s609_s2 = inlined_call_operand.vmem [shape: f32[1,128], index: 2, kind: input, shape index: {}]   ;;  %s610_s3 = inlined_call_operand.hbm [shape: bf16[128,128], index: 3, kind: input, shape index: {}]   ;;  %s611_s4 = inlined_call_operand.vmem [shape: f32[1,128], index: 4, kind: input, shape index: {}]   ;;  %s612_s5 = inlined_call_operand.hbm [shape: bf16[128,128], index: 5, kind: input, shape index: {}]   ;;  %s613_s6 = inlined_call_operand.hbm [shape: f32[8,128], index: 6, kind: output, shape index: {}]  }
   0x1   :  { %12 = vsyncpa [#allocation6], 0 }
   0x2   :  { %13 = vsyncpa [#allocation4], 0  ;;  %s521_s21 = smov [#allocation2]  }
   0x3   :  { %s25_s22 = sshll.u32 %s521_s21, 4  ;;  %s26_s22 = int_to_ptr.vmem [resolvable:$true] %s25_s22 }
   0x4   :  { %s463_s23 = scalar_lea.vmem %s26_s22, 1024  ;;  %p468_p1 = scmp.lt.s32.totalorder %s26_s22, %s26_s22 }
   0x5   :  { %p464_p0 = scmp.ne.s32.totalorder %s26_s22, %s463_s23  ;;  %p469_p2 = scmp.lt.s32.totalorder %s463_s23, %s463_s23 }
   0x7   :  { %p470_p3 = por %p469_p2, %p468_p1 }
   0x9   :  { %p471_p4 = pnand %p470_p3, %p464_p0 }
   0xb   :  { %474 = shalt.err (!%p471_p4)
}
   0xc   :  { %s522_s24 = smov 64   ;;  %s523_s25 = smov 4  }
   0xd   :  { %31 = dma.hbm_to_vmem [thread:$0]  %s610_s3, 1024, %s26_s22, [#allocation3], %s522_s24, %s522_s24, %s523_s25  }
   0xe   :  { %s524_s28 = smov [#allocation5]  }
   0xf   :  { %s39_s29 = sshll.u32 %s524_s28, 4  ;;  %s40_s29 = int_to_ptr.vmem [resolvable:$true] %s39_s29 }
  0x10   :  { %s483_s30 = scalar_lea.vmem %s40_s29, 1024  ;;  %p488_p6 = scmp.lt.s32.totalorder %s40_s29, %s40_s29 }
  0x11   :  { %p484_p5 = scmp.ne.s32.totalorder %s40_s29, %s483_s30  ;;  %p489_p7 = scmp.lt.s32.totalorder %s483_s30, %s483_s30 }
  0x13   :  { %p490_p8 = por %p489_p7, %p488_p6 }
  0x15   :  { %p491_p9 = pnand %p490_p8, %p484_p5 }
  0x17   :  { %494 = shalt.err (!%p491_p9)
}
  0x18   :  { %45 = dma.hbm_to_vmem [thread:$0]  %s612_s5, 1024, %s40_s29, [#allocation6], %s522_s24, %s522_s24, %s523_s25  }
  0x19   :  { %515 = dma.done.wait [#allocation3], 1024  }
  0x1a   :  { %516 = vsyncadd [#allocation3], 4294966272 }
  0x1b   :  { %517 = dma.done.wait [#allocation6], 1024  }
  0x1c   :  { %518 = vsyncadd [#allocation6], 4294966272  ;;  %v525_v0 = vmov 0.0   ;;  %vm526_vm0 = vmmov 0   ;;  %vm67_vm1 = vcmask 1041408   ;;  %v53_v2 = vld [vmem:[%s607_s0] sm:$0xff] }
  0x1d   :  { %386 = vmatprep.subr.bf16.mxu0 %v525_v0  ;;  %388 = vmatprep.mubr.msk.bf16.mxu0 %vm526_vm0, %v525_v0  ;;  %v55_v1 = vld [vmem:[%s608_s1] sm:$0x3]  ;;  %v54_v4 = vpack.c.bf16 %v53_v2, %v53_v2  ;;  %v439_v5 = vld [vmem:[#allocation2 + $0x38] sm:$0xff]   ;;  %vm63_vm2 = vcmask 31744   ;;  %v440_v6 = vld [vmem:[#allocation2 + $0x30] sm:$0xff]  }
  0x1e   :  { %392 = vmatprep.subr.bf16.mxu1 %v525_v0  ;;  %408 = vmatprep.mubr.msk.bf16.mxu1 %vm526_vm0, %v525_v0  ;;  %v69_v3 = vsel %vm67_vm1, %v55_v1, 0  ;;  %v441_v7 = vld [vmem:[#allocation2 + $0x28] sm:$0xff]   ;;  %v442_v8 = vld [vmem:[#allocation2 + $0x20] sm:$0xff]   ;;  %v443_v9 = vld [vmem:[#allocation2 + $0x18] sm:$0xff]  }
  0x1f   :  { %387 = vmatpush3.bf16.msra.mxu0 %v69_v3  ;;  %393 = vmatpush3.bf16.msra.mxu1 %v439_v5  ;;  %v444_v10 = vld [vmem:[#allocation2 + $0x10] sm:$0xff]   ;;  %v445_v11 = vld [vmem:[#allocation2 + $0x8] sm:$0xff]   ;;  %v446_v12 = vld [vmem:[#allocation2] sm:$0xff]  }
  0x20   :  { %412 = vmatprep.subr.bf16.mxu0 %v525_v0  ;;  %394 = vmatprep.subr.bf16.mxu1 %v525_v0  ;;  %v447_v13 = vld [vmem:[#allocation5 + $0x38] sm:$0xff]   ;;  %v448_v14 = vld [vmem:[#allocation5 + $0x30] sm:$0xff]   ;;  %v449_v15 = vld [vmem:[#allocation5 + $0x28] sm:$0xff]  }
  0x21   :  { %v450_v16 = vld [vmem:[#allocation5 + $0x20] sm:$0xff]   ;;  %v451_v17 = vld [vmem:[#allocation5 + $0x18] sm:$0xff]   ;;  %v452_v18 = vld [vmem:[#allocation5 + $0x10] sm:$0xff]  }
  0x22   :  { %389 = vmatmul.mubr.msk.bf16.vlgmr.msra.gmra.mxu0 %vm63_vm2, %v54_v4  ;;  %v347_v19 = vld [vmem:[%s609_s2] ss:$0 sm:$0xff]  ;;  %v453_v27 = vld [vmem:[#allocation5 + $0x8] sm:$0xff]   ;;  %s527_s2 = smov [#allocation7]  }
  0x23   :  { %428 = vmatprep.mubr.msk.bf16.mxu0 %vm526_vm0, %v525_v0  ;;  %395 = vmatpush3.bf16.msra.mxu1 %v440_v6  ;;  %v454_v28 = vld [vmem:[#allocation5] sm:$0xff]   ;;  %s337_s13 = sshll.u32 %s527_s2, 4  ;;  %s338_s13 = int_to_ptr.vmem [resolvable:$true] %s337_s13 }
  0x24   :  { %396 = vmatprep.subr.bf16.mxu1 %v525_v0  ;;  %413 = vmatpush3.bf16.msra.mxu0 %v447_v13  ;;  %v349_v29 = vld [vmem:[%s611_s4] ss:$0 sm:$0xff]  ;;  %s495_s14 = scalar_lea.vmem %s338_s13, 128  ;;  %p500_p11 = scmp.lt.s32.totalorder %s338_s13, %s338_s13 }
  0x25   :  { %414 = vmatprep.subr.bf16.mxu0 %v525_v0  ;;  %p496_p10 = scmp.ne.s32.totalorder %s338_s13, %s495_s14  ;;  %p501_p12 = scmp.lt.s32.totalorder %s495_s14, %s495_s14 }
  0x27   :  { %397 = vmatpush3.bf16.msra.mxu1 %v441_v7  ;;  %p502_p13 = por %p501_p12, %p500_p11 }
  0x28   :  { %398 = vmatprep.subr.bf16.mxu1 %v525_v0  ;;  %415 = vmatpush3.bf16.msra.mxu0 %v448_v14 }
  0x29   :  { %416 = vmatprep.subr.bf16.mxu0 %v525_v0  ;;  %p503_p0 = pnand %p502_p13, %p496_p10 }
  0x2b   :  { %399 = vmatpush3.bf16.msra.mxu1 %v442_v8 }
  0x2c   :  { %400 = vmatprep.subr.bf16.mxu1 %v525_v0  ;;  %417 = vmatpush3.bf16.msra.mxu0 %v449_v15 }
  0x2d   :  { %418 = vmatprep.subr.bf16.mxu0 %v525_v0 }
  0x2f   :  { %401 = vmatpush3.bf16.msra.mxu1 %v443_v9 }
  0x30   :  { %402 = vmatprep.subr.bf16.mxu1 %v525_v0  ;;  %419 = vmatpush3.bf16.msra.mxu0 %v450_v16 }
  0x31   :  { %420 = vmatprep.subr.bf16.mxu0 %v525_v0 }
  0x33   :  { %403 = vmatpush3.bf16.msra.mxu1 %v444_v10 }
  0x34   :  { %404 = vmatprep.subr.bf16.mxu1 %v525_v0  ;;  %421 = vmatpush3.bf16.msra.mxu0 %v451_v17 }
  0x35   :  { %422 = vmatprep.subr.bf16.mxu0 %v525_v0 }
  0x37   :  { %405 = vmatpush3.bf16.msra.mxu1 %v445_v11 }
  0x38   :  { %406 = vmatprep.subr.bf16.mxu1 %v525_v0  ;;  %423 = vmatpush3.bf16.msra.mxu0 %v452_v18 }
  0x39   :  { %424 = vmatprep.subr.bf16.mxu0 %v525_v0 }
  0x3b   :  { %407 = vmatpush3.bf16.msra.mxu1 %v446_v12 }
  0x3c   :  { %425 = vmatpush3.bf16.msra.mxu0 %v453_v27 }
  0x3d   :  { %426 = vmatprep.subr.bf16.mxu0 %v525_v0 }
  0x40   :  { %427 = vmatpush3.bf16.msra.mxu0 %v454_v28 }
  0xe2   :  { %v105_v20 = vpop.f32.mrf.mxu0 }
  0xe3   :  { %v106_v21 = vadd.f32 %v347_v19, %v105_v20 }
  0xe4   :  { %v390_v22 = vpop.f32.mrf.mxu0 }
  0xe5   :  { %v111_v23 = vmax.f32 %v106_v21, 0.0 }
  0xe6   :  { %v108_v24 = vpop.f32.mrf.mxu0 }
  0xe7   :  { %v112_v25 = vpack.c.bf16 %v111_v23, %v111_v23 }
  0xe8   :  { %v391_v26 = vpop.f32.mrf.mxu0 }
  0xe9   :  { %409 = vmatmul.mubr.bf16.vlgmr.msra.gmra.mxu1 %v112_v25 }
 0x1a9   :  { %v218_v30 = vpop.f32.mrf.mxu1 }
 0x1aa   :  { %v219_v31 = vadd.f32 %v349_v29, %v218_v30 }
 0x1ab   :  { %v410_v32 = vpop.f32.mrf.mxu1 }
 0x1ac   :  { %v224_v33 = vmax.f32 %v219_v31, 0.0 }
 0x1ad   :  { %v221_v34 = vpop.f32.mrf.mxu1 }
 0x1ae   :  { %v225_v35 = vpack.c.bf16 %v224_v33, %v224_v33 }
 0x1af   :  { %v411_v36 = vpop.f32.mrf.mxu1 }
 0x1b0   :  { %429 = vmatmul.mubr.bf16.vlgmr.msra.gmra.mxu0 %v225_v35 }
 0x270   :  { %v324_v37 = vpop.f32.mrf.mxu0 }
 0x271   :  { %330 = vst [vmem:[#allocation7] sm:$0xff] %v324_v37 }
 0x272   :  { %v430_v38 = vpop.f32.mrf.mxu0 }
 0x273   :  { %506 = shalt.err (!%p503_p0)
}
 0x274   :  { %340 = dma.vmem_to_hbm [thread:$0]  %s338_s13, 128, %s613_s6, [#allocation4]   ;;  %v327_v39 = vpop.f32.mrf.mxu0 }
 0x276   :  { %v431_v40 = vpop.f32.mrf.mxu0 }
 0x277   :  { %519 = dma.done.wait [#allocation4], 128  }
 0x278   :  { %520 = vsyncadd [#allocation4], 4294967168 }
 0x279   :  { %344 = vsyncpa [#allocation3], 1 }
 0x27a   :  { %345 = vsyncpa [#allocation6], 1 }
 0x27b   :  { %346 = vsyncpa [#allocation4], 1 }

</bundles_post_ra>
